<compile_context>
chip_gen: v7x
topology: tpu7x:2x2x1
jax: 0.10.0
libtpu: 0.0.40
codegen_flags: <defaults>
</compile_context>

<pallas_src>
import math
import jax
import jax.numpy as jnp
from jax.experimental import pallas as pl
from jax.experimental.pallas import tpu as pltpu

SUBLANE = 8


def _round_up(x, m):
    return ((x + m - 1) // m) * m


def value_network_kernel(x_ref, w1_ref, b1_ref, w2_ref, b2_ref, w3_ref, b3_ref, o_ref):
    x = x_ref[...]
    # Layer 1: Linear + ReLU
    y1 = jnp.dot(x, w1_ref[...], preferred_element_type=jnp.float32) + b1_ref[...]
    y1 = jnp.maximum(y1, 0.0)
    # Layer 2: Linear + ReLU
    y2 = jnp.dot(y1, w2_ref[...], preferred_element_type=jnp.float32) + b2_ref[...]
    y2 = jnp.maximum(y2, 0.0)
    # Layer 3: Linear (no activation); stored at its true width (masked vst is far cheaper
    # than writing 128x-padded lanes to HBM when out_size is tiny).
    y3 = jnp.dot(y2, w3_ref[...], preferred_element_type=jnp.float32) + b3_ref[...]
    o_ref[...] = y3.astype(o_ref.dtype)


def _auto_tile_b(B):
    # With unpadded features, a (tile_b, in+hid+out) f32 working set is tiny; the 2048 cap
    # just amortizes the ~0.35us/step grid overhead while staying far under VMEM limits on
    # all generations (v5e/v6e 128 MiB, v7x 64 MiB).
    tile_b = min(2048, _round_up(B, SUBLANE))
    if B > 2 * SUBLANE:
        # Guarantee >=2 grid iterations so the "parallel" batch axis can shard across
        # v7x's two TensorCores (no effect on single-TC v5e/v6e).
        tile_b = min(tile_b, _round_up(pl.cdiv(B, 2), SUBLANE))
    return max(SUBLANE, tile_b)


def value_network_forward(state, params, tile_b=None):
    """state: (B, input_size) float32; params: dict of w1,b1,w2,b2,w3,b3 with W as (in, out)."""
    w1, b1 = params["w1"], params["b1"]
    w2, b2 = params["w2"], params["b2"]
    w3, b3 = params["w3"], params["b3"]

    B, in_size = state.shape
    hidden = w1.shape[1]
    out_size = w3.shape[1]

    if tile_b is None:
        tile_b = _auto_tile_b(B)
    grid = (pl.cdiv(B, tile_b),)

    def resident(shape):
        # Constant block index: parameter is DMA'd once and stays VMEM-resident across the grid.
        return pl.BlockSpec(shape, lambda i: (0, 0))

    # VMEM accounting: resident params (x2 for Pallas' default double-buffer), double-buffered
    # input/output activation tiles, kernel-live intermediates, plus headroom.
    weight_bytes = 4 * (in_size * hidden + hidden * hidden + hidden * out_size
                        + 2 * hidden + out_size)
    act_bytes = 2 * tile_b * (in_size + out_size) * 4        # in + out tiles, 2 buffers each
    inter_bytes = 4 * tile_b * hidden * 4                     # y1/y2/matmul temporaries
    vmem_limit = int(2 * weight_bytes + act_bytes + inter_bytes + (16 << 20))

    out = pl.pallas_call(
        value_network_kernel,
        out_shape=jax.ShapeDtypeStruct((B, out_size), jnp.float32),
        grid=grid,
        in_specs=[
            pl.BlockSpec((tile_b, in_size), lambda i: (i, 0)),
            resident((in_size, hidden)), resident((1, hidden)),
            resident((hidden, hidden)), resident((1, hidden)),
            resident((hidden, out_size)), resident((1, out_size)),
        ],
        out_specs=pl.BlockSpec((tile_b, out_size), lambda i: (i, 0)),
        compiler_params=pltpu.CompilerParams(
            dimension_semantics=("parallel",),
            vmem_limit_bytes=vmem_limit,
        ),
    )(state.astype(jnp.float32), w1, b1, w2, b2, w3, b3)

    return out


def init_params(key, input_size, hidden_size, output_size):
    """Deterministic init matching nn.Linear's default U(-1/sqrt(fan_in), 1/sqrt(fan_in))."""
    ks = jax.random.split(key, 6)

    def linear_init(kw, kb, fan_in, fan_out):
        bound = 1.0 / math.sqrt(fan_in)
        w = jax.random.uniform(kw, (fan_in, fan_out), jnp.float32, -bound, bound)
        b = jax.random.uniform(kb, (1, fan_out), jnp.float32, -bound, bound)
        return w, b

    w1, b1 = linear_init(ks[0], ks[1], input_size, hidden_size)
    w2, b2 = linear_init(ks[2], ks[3], hidden_size, hidden_size)
    w3, b3 = linear_init(ks[4], ks[5], hidden_size, output_size)
    return {"w1": w1, "b1": b1, "w2": w2, "b2": b2, "w3": w3, "b3": b3}


def value_network_ref(state, params):
    y1 = jnp.maximum(state @ params["w1"] + params["b1"], 0.0)
    y2 = jnp.maximum(y1 @ params["w2"] + params["b2"], 0.0)
    return y2 @ params["w3"] + params["b3"]


if __name__ == "__main__":
    key = jax.random.PRNGKey(0)
    k_param, k_state = jax.random.split(key)

    batch = 8
    input_size = 8     # state dimension
    hidden_size = 32
    output_size = 1    # scalar value

    params = init_params(k_param, input_size, hidden_size, output_size)
    state = jax.random.normal(k_state, (batch, input_size), jnp.float32)

    out = value_network_forward(state, params)
    out = jax.block_until_ready(out)

    ref = value_network_ref(state, params)
    assert out.shape == (batch, output_size)
    assert jnp.allclose(out, ref, atol=1e-5, rtol=1e-5)

    print("KERNEL_OK")
</pallas_src>

<mosaic_0001>
module attributes {stable_mosaic.version = 11 : i64} {
  func.func @value_network_kernel(%arg0: i32, %arg1: memref<8x8xf32, #tpu.memory_space<vmem>>, %arg2: memref<8x32xf32, #tpu.memory_space<vmem>>, %arg3: memref<1x32xf32, #tpu.memory_space<vmem>>, %arg4: memref<32x32xf32, #tpu.memory_space<vmem>>, %arg5: memref<1x32xf32, #tpu.memory_space<vmem>>, %arg6: memref<32x1xf32, #tpu.memory_space<vmem>>, %arg7: memref<1x1xf32, #tpu.memory_space<vmem>>, %arg8: memref<8x1xf32, #tpu.memory_space<vmem>>) attributes {dimension_semantics = [#tpu.dimension_semantics<parallel>], iteration_bounds = array<i64: 1>, scalar_prefetch = 0 : i64, scratch_operands = 0 : i64, tpu.core_type = #tpu.core_type<tc>, window_params = [{transform_indices = @transform_0, window_bounds = array<i64: 8, 8>}, {pipeline_mode = #tpu.pipeline_mode<synchronous>, transform_indices = @transform_1, window_bounds = array<i64: 8, 32>}, {pipeline_mode = #tpu.pipeline_mode<synchronous>, transform_indices = @transform_2, window_bounds = array<i64: 1, 32>}, {pipeline_mode = #tpu.pipeline_mode<synchronous>, transform_indices = @transform_3, window_bounds = array<i64: 32, 32>}, {pipeline_mode = #tpu.pipeline_mode<synchronous>, transform_indices = @transform_4, window_bounds = array<i64: 1, 32>}, {pipeline_mode = #tpu.pipeline_mode<synchronous>, transform_indices = @transform_5, window_bounds = array<i64: 32, 1>}, {pipeline_mode = #tpu.pipeline_mode<synchronous>, transform_indices = @transform_6, window_bounds = array<i64: 1, 1>}, {transform_indices = @transform_7, window_bounds = array<i64: 8, 1>}]} {
    %c0 = arith.constant 0 : index
    %c0_0 = arith.constant 0 : index
    %0 = vector.load %arg1[%c0, %c0_0] : memref<8x8xf32, #tpu.memory_space<vmem>>, vector<8x8xf32>
    %c0_1 = arith.constant 0 : index
    %c0_2 = arith.constant 0 : index
    %1 = vector.load %arg2[%c0_1, %c0_2] : memref<8x32xf32, #tpu.memory_space<vmem>>, vector<8x32xf32>
    %cst = arith.constant dense<0.000000e+00> : vector<8x32xf32>
    %2 = tpu.matmul %0, %1, %cst {dimension_numbers = #tpu.dot_dimension_numbers<[1], [0], [0], [1], [0, 0, 1, 1], [], []>} : vector<8x8xf32>, vector<8x32xf32>, vector<8x32xf32> -> vector<8x32xf32>
    %c0_3 = arith.constant 0 : index
    %c0_4 = arith.constant 0 : index
    %3 = vector.load %arg3[%c0_3, %c0_4] : memref<1x32xf32, #tpu.memory_space<vmem>>, vector<1x32xf32>
    %4 = vector.broadcast %3 : vector<1x32xf32> to vector<8x32xf32>
    %5 = arith.addf %2, %4 : vector<8x32xf32>
    %cst_5 = arith.constant 0.000000e+00 : f32
    %6 = vector.broadcast %cst_5 : f32 to vector<8x32xf32>
    %7 = arith.maximumf %5, %6 : vector<8x32xf32>
    %c0_6 = arith.constant 0 : index
    %c0_7 = arith.constant 0 : index
    %8 = vector.load %arg4[%c0_6, %c0_7] : memref<32x32xf32, #tpu.memory_space<vmem>>, vector<32x32xf32>
    %cst_8 = arith.constant dense<0.000000e+00> : vector<8x32xf32>
    %9 = tpu.matmul %7, %8, %cst_8 {dimension_numbers = #tpu.dot_dimension_numbers<[1], [0], [0], [1], [0, 0, 1, 1], [], []>} : vector<8x32xf32>, vector<32x32xf32>, vector<8x32xf32> -> vector<8x32xf32>
    %c0_9 = arith.constant 0 : index
    %c0_10 = arith.constant 0 : index
    %10 = vector.load %arg5[%c0_9, %c0_10] : memref<1x32xf32, #tpu.memory_space<vmem>>, vector<1x32xf32>
    %11 = vector.broadcast %10 : vector<1x32xf32> to vector<8x32xf32>
    %12 = arith.addf %9, %11 : vector<8x32xf32>
    %cst_11 = arith.constant 0.000000e+00 : f32
    %13 = vector.broadcast %cst_11 : f32 to vector<8x32xf32>
    %14 = arith.maximumf %12, %13 : vector<8x32xf32>
    %c0_12 = arith.constant 0 : index
    %c0_13 = arith.constant 0 : index
    %15 = vector.load %arg6[%c0_12, %c0_13] : memref<32x1xf32, #tpu.memory_space<vmem>>, vector<32x1xf32>
    %cst_14 = arith.constant dense<0.000000e+00> : vector<8x1xf32>
    %16 = tpu.matmul %14, %15, %cst_14 {dimension_numbers = #tpu.dot_dimension_numbers<[1], [0], [0], [1], [0, 0, 1, 1], [], []>} : vector<8x32xf32>, vector<32x1xf32>, vector<8x1xf32> -> vector<8x1xf32>
    %c0_15 = arith.constant 0 : index
    %c0_16 = arith.constant 0 : index
    %17 = vector.load %arg7[%c0_15, %c0_16] : memref<1x1xf32, #tpu.memory_space<vmem>>, vector<1x1xf32>
    %18 = vector.broadcast %17 : vector<1x1xf32> to vector<8x1xf32>
    %19 = arith.addf %16, %18 : vector<8x1xf32>
    %c0_17 = arith.constant 0 : index
    %c0_18 = arith.constant 0 : index
    %20 = vector.load %arg8[%c0_17, %c0_18] : memref<8x1xf32, #tpu.memory_space<vmem>>, vector<8x1xf32>
    tpu.vector_store %arg8[%c0_17, %c0_18], %19 {strides = array<i32>} : memref<8x1xf32, #tpu.memory_space<vmem>>, vector<8x1xf32>,
    return
  }
  func.func @transform_0(%arg0: i32) -> (i32, i32) {
    %c0_i32 = arith.constant 0 : i32
    %c0_i32_0 = arith.constant 0 : i32
    return %arg0, %c0_i32 : i32, i32
  }
  func.func @transform_1(%arg0: i32) -> (i32, i32) {
    %c0_i32 = arith.constant 0 : i32
    %c0_i32_0 = arith.constant 0 : i32
    %c0_i32_1 = arith.constant 0 : i32
    return %c0_i32, %c0_i32_0 : i32, i32
  }
  func.func @transform_2(%arg0: i32) -> (i32, i32) {
    %c0_i32 = arith.constant 0 : i32
    %c0_i32_0 = arith.constant 0 : i32
    %c0_i32_1 = arith.constant 0 : i32
    return %c0_i32, %c0_i32_0 : i32, i32
  }
  func.func @transform_3(%arg0: i32) -> (i32, i32) {
    %c0_i32 = arith.constant 0 : i32
    %c0_i32_0 = arith.constant 0 : i32
    %c0_i32_1 = arith.constant 0 : i32
    return %c0_i32, %c0_i32_0 : i32, i32
  }
  func.func @transform_4(%arg0: i32) -> (i32, i32) {
    %c0_i32 = arith.constant 0 : i32
    %c0_i32_0 = arith.constant 0 : i32
    %c0_i32_1 = arith.constant 0 : i32
    return %c0_i32, %c0_i32_0 : i32, i32
  }
  func.func @transform_5(%arg0: i32) -> (i32, i32) {
    %c0_i32 = arith.constant 0 : i32
    %c0_i32_0 = arith.constant 0 : i32
    %c0_i32_1 = arith.constant 0 : i32
    return %c0_i32, %c0_i32_0 : i32, i32
  }
  func.func @transform_6(%arg0: i32) -> (i32, i32) {
    %c0_i32 = arith.constant 0 : i32
    %c0_i32_0 = arith.constant 0 : i32
    %c0_i32_1 = arith.constant 0 : i32
    return %c0_i32, %c0_i32_0 : i32, i32
  }
  func.func @transform_7(%arg0: i32) -> (i32, i32) {
    %c0_i32 = arith.constant 0 : i32
    %c0_i32_0 = arith.constant 0 : i32
    return %arg0, %c0_i32 : i32, i32
  }
}

</mosaic_0001>

<bundles_post_ra>
// kernel: tpu_custom_call.1
= control target key start
LH: loop header
LB: loop body
LE: loop exit
PB: predicated region body
PF: predicated region fallthrough
CT: control target
= control target key end

     0   :  { %s481_s0 = inlined_call_operand.vmem [shape: f32[8,8], index: 0, kind: input, shape index: {}]   ;;  %s482_s1 = inlined_call_operand.vmem [shape: f32[8,32], index: 1, kind: input, shape index: {}]   ;;  %s483_s2 = inlined_call_operand.hbm [shape: f32[1,32], index: 2, kind: input, shape index: {}]   ;;  %s484_s3 = inlined_call_operand.vmem [shape: f32[32,32], index: 3, kind: input, shape index: {}]   ;;  %s485_s4 = inlined_call_operand.vmem [shape: f32[1,32], index: 4, kind: input, shape index: {}]   ;;  %s486_s5 = inlined_call_operand.vmem [shape: f32[32,1], index: 5, kind: input, shape index: {}]   ;;  %s487_s6 = inlined_call_operand.<no memory space> [shape: f32[1,1], index: 6, kind: input, shape index: {}]   ;;  %s488_s7 = inlined_call_operand.vmem [shape: f32[8,1], index: 7, kind: output, shape index: {}]  }
   0x1   :  { %v12_v0 = vstv %s487_s6 }
   0x2   :  { %13 = vst [vmem:[#allocation2] sm:$0x1] %v12_v0 }
   0x3   :  { %14 = vsyncpa [#allocation4], 0  ;;  %s386_s26 = smov [#allocation3]   ;;  %s362_s30 = scalar_lea.hbm %s483_s2, 16 }
   0x4   :  { %s25_s27 = sshll.u32 %s386_s26, 4  ;;  %p363_p0 = scmp.ne.s32.totalorder %s483_s2, %s362_s30  ;;  %s26_s27 = int_to_ptr.vmem [resolvable:$true] %s25_s27 }
   0x5   :  { %p366_p1 = scmp.lt.u32.totalorder %s362_s30, %s483_s2 }
   0x7   :  { %p368_p2 = pnand %p366_p1, %p363_p0 }
   0x9   :  { %371 = shalt.err (!%p368_p2)
}
   0xa   :  { %s372_s6 = scalar_lea.vmem %s26_s27, 16  ;;  %s376_s12 = scalar_lea.vmem %s26_s27, 32 }
   0xb   :  { %p373_p3 = scmp.ne.s32.totalorder %s26_s27, %s372_s6  ;;  %p377_p4 = scmp.lt.s32.totalorder %s26_s27, %s26_s27 }
   0xc   :  { %p378_p5 = scmp.lt.s32.totalorder %s376_s12, %s372_s6 }
   0xe   :  { %p379_p6 = por %p378_p5, %p377_p4 }
  0x10   :  { %p380_p7 = pnand %p379_p6, %p373_p3 }
  0x12   :  { %383 = shalt.err (!%p380_p7)
}
  0x13   :  { %28 = dma.hbm_to_vmem [thread:$0]  %s483_s2, 16, %s26_s27, [#allocation4]  }
  0x14   :  { %384 = dma.done.wait [#allocation4], 16  }
  0x15   :  { %385 = vsyncadd [#allocation4], 4294967280  ;;  %v387_v1 = vmov 0.0   ;;  %vm388_vm0 = vmmov 0   ;;  %v389_v2 = vmov 0.0|0.0   ;;  %vm49_vm1 = vcmask 64512  }
  0x16   :  { %319 = vmatprep.subr.mxu0 %v387_v1  ;;  %321 = vmatprep.mubr.msk.f32.mxu0 %vm388_vm0, %v387_v1  ;;  %v41_v3 = vld [vmem:[%s482_s1] sm:$0xff]  ;;  %v125_v6 = vld [vmem:[%s484_s3 + $0x8] sm:$0xff]  ;;  %v126_v8 = vld [vmem:[%s484_s3 + $0x10] sm:$0xff]  ;;  %vm135_vm2 = vcmask 261120   ;;  %vm294_vm3 = vcmask 7168  }
  0x17   :  { %346 = vmatprep.subr.bf16.mxu1 %v389_v2  ;;  %332 = vmatprep.mubr.msk.f32.mxu1 %vm388_vm0, %v387_v1  ;;  %v40_v4 = vld [vmem:[%s481_s0] sm:$0xff]  ;;  %v127_v9 = vld [vmem:[%s484_s3 + $0x18] sm:$0xff]  ;;  %v211_v12 = vld [vmem:[%s486_s5 + $0x8] sm:$0xff] }
  0x18   :  { %v124_v5 = vld [vmem:[%s484_s3] sm:$0xff]  ;;  %320 = vmatpush3.msra.mxu0 %v41_v3  ;;  %v350_v10 = vpack.c.bf16 %v127_v9, %v126_v8  ;;  %v212_v19 = vld [vmem:[%s486_s5 + $0x10] sm:$0xff]  ;;  %v213_v20 = vld [vmem:[%s486_s5 + $0x18] sm:$0xff] }
  0x19   :  { %322 = vmatmul.mubr.msk.f32.vlgmr.msra.gmra.mrb[0].mxu0 %vm49_vm1, %v40_v4  ;;  %v347_v7 = vpack.c.bf16 %v125_v6, %v124_v5  ;;  %352 = vmatprep.subr.bf16.mxu0 %v389_v2  ;;  %v210_v11 = vld [vmem:[%s486_s5] sm:$0xff]  ;;  %v356_v21 = vpack.c.bf16 %v213_v20, %v212_v19 }
  0x1a   :  { %343 = vmatprep.mubr.msk.f32.mxu0 %vm388_vm0, %v387_v1  ;;  %v353_v13 = vpack.c.bf16 %v211_v12, %v210_v11  ;;  %v301_v14 = vld [vmem:[#allocation3] ss:$0 sm:$0xff]  ;;  %v303_v22 = vld [vmem:[%s485_s4] ss:$0 sm:$0xff] }
  0x1b   :  { %348 = vmatpush3.bf16.msra.mxu1 %v347_v7  ;;  %v305_v27 = vld [vmem:[#allocation2] ss:$0 sm:$0xff] }
  0x1c   :  { %349 = vmatprep.subr.bf16.mxu1 %v389_v2  ;;  %354 = vmatpush3.bf16.msra.mxu0 %v353_v13 }
  0x1d   :  { %355 = vmatprep.subr.bf16.mxu0 %v389_v2 }
  0x1f   :  { %351 = vmatpush3.bf16.msra.mxu1 %v350_v10 }
  0x20   :  { %357 = vmatpush3.bf16.msra.mxu0 %v356_v21 }
  0xec   :  { %v119_v15 = vpop.f32.mrb[0].mxu0 }
  0xed   :  { %v120_v16 = vadd.f32 %v301_v14, %v119_v15  ;;  %v323_v17 = vpop.f32.mrb[1].mxu0 }
  0xef   :  { %v123_v18 = vmax.f32 %v120_v16, 0.0 }
  0xf1   :  { %333 = vmatmul.mubr.msk.f32.vlgmr.msra.gmra.mrb[0].mxu1 %vm135_vm2, %v123_v18 }
 0x1c4   :  { %v205_v23 = vpop.f32.mrb[0].mxu1 }
 0x1c5   :  { %v206_v24 = vadd.f32 %v303_v22, %v205_v23  ;;  %v334_v25 = vpop.f32.mrb[1].mxu1 }
 0x1c7   :  { %v209_v26 = vmax.f32 %v206_v24, 0.0 }
 0x1c9   :  { %344 = vmatmul.mubr.msk.f32.vlgmr.msra.gmra.mrb[2].mxu0 %vm135_vm2, %v209_v26 }
 0x29c   :  { %v290_v28 = vpop.f32.mrb[2].mxu0 }
 0x29d   :  { %v291_v29 = vadd.f32 %v305_v27, %v290_v28  ;;  %v345_v30 = vpop.f32.mrb[3].mxu0 }
 0x29f   :  { %295 = vst.msk [vmem:[%s488_s7] sm:$0xff] %vm294_vm3, %v291_v29 }
 0x2a0   :  { %300 = vsyncpa [#allocation4], 1 }

</bundles_post_ra>
